<compile_context>
chip_gen: v7x
topology: tpu7x:2x2x1
jax: 0.10.0
libtpu: 0.0.40
codegen_flags: <defaults>
</compile_context>

<pallas_src>
import functools

import jax
import jax.numpy as jnp
from jax.experimental import pallas as pl
from jax.experimental.pallas import tpu as pltpu


def _round_up(n, m):
    return ((n + m - 1) // m) * m


def _sublane(dtype):
    # Minimum sublane granularity for the dtype: 8 (f32), 16 (bf16), 32 (i8/fp8).
    return max(8, 32 // jnp.dtype(dtype).itemsize)


def _mlp_with_context_kernel(x_ref, hstate_ref, w1_ref, b1_ref,
                             w2_ref, b2_ref, out_ref, new_hstate_ref,
                             *, compute_dtype):
    f32 = jnp.float32

    # (x + hidden_state) in f32 on the VPU (matches PyTorch), then cast the
    # MXU operand to the (possibly narrower) compute dtype.
    xin = x_ref[...].astype(f32) + hstate_ref[...].astype(f32)

    # linear1: [TM, C_in] @ [C_in, C_hid] on the MXU, f32 accumulation.
    h = jnp.dot(xin.astype(compute_dtype), w1_ref[...],
                preferred_element_type=f32)
    h = h + b1_ref[...].astype(f32)               # b1 is [1, C_hid], broadcasts

    # The module stores the *pre-activation* linear1 output as the new hidden
    # state.  Store straight from the f32 accumulator in the caller's dtype.
    new_hstate_ref[...] = h.astype(new_hstate_ref.dtype)

    # relu (dropout=0.0 and batch_norm=False for the default module config)
    h = jnp.maximum(h, 0.0)

    # linear2: [TM, C_hid] @ [C_hid, C_out] on the MXU, f32 accumulation.
    out = jnp.dot(h.astype(compute_dtype), w2_ref[...],
                  preferred_element_type=f32)
    out = out + b2_ref[...].astype(f32)
    out_ref[...] = out.astype(out_ref.dtype)


def make_mlp_with_context(w1, b1, w2, b2, *, compute_dtype=jnp.bfloat16,
                          tile_rows=512):
    """Builds a forward:  (x [N,C_in], hidden [N,C_in] or None) -> (out, new_hidden).

    Args:
      w1: [C_in, C_hid]  linear1 weight, already transposed (y = x @ W + b)
      b1: [C_hid]
      w2: [C_hid, C_out] linear2 weight, already transposed
      b2: [C_out]
      compute_dtype: dtype of the MXU operands (default bf16; accumulation and
        the (x + hidden) add stay f32; outputs are emitted in x.dtype).
      tile_rows: row-tile size (rounded to the dtype-correct sublane multiple).
    """
    c_in, c_hid = w1.shape
    c_hid2, c_out = w2.shape
    assert c_hid == c_hid2, "linear1/linear2 hidden dims must match"
    assert b1.shape == (c_hid,) and b2.shape == (c_out,)

    cd = jnp.dtype(compute_dtype)

    # Weights cast once at build time (bf16 by default -> half HBM/VMEM, full
    # MXU rate).  Biases stay in their original dtype and are added to the
    # f32 accumulator inside the kernel.
    w1_c = w1.astype(cd)
    w2_c = w2.astype(cd)
    b1_r = b1.reshape(1, c_hid)
    b2_r = b2.reshape(1, c_out)

    kernel = functools.partial(_mlp_with_context_kernel, compute_dtype=cd)

    @jax.jit
    def _forward(x, hidden_state):
        n = x.shape[0]
        sub = _sublane(x.dtype)
        tm = _round_up(min(tile_rows, n), sub)
        grid = (pl.cdiv(n, tm),)          # masked partial last tile, no N padding

        # Row-tiled activation blocks (pipelined) with full-extent feature dims
        # (block dim == array dim, so no feature padding / extra HBM passes).
        row_spec = lambda c: pl.BlockSpec((tm, c), lambda i: (i, 0))
        # Resident blocks: constant index_map -> stay in VMEM across all tiles.
        res_spec = lambda r, c: pl.BlockSpec((r, c), lambda i: (0, 0))

        # VMEM budget: double-buffered row tiles + resident weights (also
        # double-buffered by the default pipeliner) + biases, with headroom.
        act_bytes = 2 * tm * (2 * c_in + c_hid + c_out) * x.dtype.itemsize
        wgt_bytes = 2 * (c_in * c_hid + c_hid * c_out) * cd.itemsize
        bias_bytes = 2 * (c_hid + c_out) * b1_r.dtype.itemsize
        need = int(1.5 * (act_bytes + wgt_bytes + bias_bytes)) + (1 << 20)
        # TODO(synk): if `need` approaches 64 MiB (v7x per-core VMEM; weights
        # duplicated per TC), tile the hidden/output feature dims instead of
        # keeping both weights fully resident, and single-buffer the resident
        # weights (pl.Buffered(1)).
        if need > (16 << 20):   # only raise above the v5e 16 MiB scoped default
            cparams = pltpu.CompilerParams(
                dimension_semantics=("parallel",),
                vmem_limit_bytes=min(need, 64 << 20))
        else:
            cparams = pltpu.CompilerParams(dimension_semantics=("parallel",))

        # In-place hidden-state update when the recurrence type-checks.
        alias = ({1: 1} if (c_in == c_hid and hidden_state.dtype == x.dtype)
                 else {})

        return pl.pallas_call(
            kernel,
            grid=grid,
            in_specs=(
                row_spec(c_in),            # x tile
                row_spec(c_in),            # hidden tile
                res_spec(c_in, c_hid),     # w1 (resident)
                res_spec(1, c_hid),        # b1 (resident)
                res_spec(c_hid, c_out),    # w2 (resident)
                res_spec(1, c_out),        # b2 (resident)
            ),
            out_specs=(
                row_spec(c_out),           # out tile   (emitted in x.dtype)
                row_spec(c_hid),           # new hidden (emitted in x.dtype)
            ),
            out_shape=(
                jax.ShapeDtypeStruct((n, c_out), x.dtype),
                jax.ShapeDtypeStruct((n, c_hid), x.dtype),
            ),
            input_output_aliases=alias,
            compiler_params=cparams,
        )(x, hidden_state, w1_c, b1_r, w2_c, b2_r)

    def forward(x, hidden_state=None):
        assert x.ndim == 2 and x.shape[1] == c_in, "x must be [N, C_in]"
        if hidden_state is None:           # first call: hidden is zeros (PyTorch)
            hidden_state = jnp.zeros_like(x)
        assert hidden_state.shape == x.shape and hidden_state.dtype == x.dtype
        return _forward(x, hidden_state)

    # TODO(synk): batch_norm=True (BatchNorm1d running stats) and dropout>0
    # (training-mode RNG masking) are not exercised by the default module
    # config and are left unimplemented in the kernel.
    return forward


def reference_forward(x, hidden_state, w1, b1, w2, b2):
    """Pure-JAX reference matching the PyTorch forward (default config)."""
    h = (x + hidden_state) @ w1 + b1
    new_hidden = h
    out = jnp.maximum(h, 0.0) @ w2 + b2
    return out, new_hidden


if __name__ == "__main__":
    key = jax.random.PRNGKey(0)

    def init_params(k, c_in, c_hid, c_out):
        kw1, kb1, kw2, kb2 = jax.random.split(k, 4)
        lim1 = 1.0 / jnp.sqrt(jnp.float32(c_in))
        lim2 = 1.0 / jnp.sqrt(jnp.float32(c_hid))
        w1 = jax.random.uniform(kw1, (c_in, c_hid), jnp.float32, -lim1, lim1)
        b1 = jax.random.uniform(kb1, (c_hid,), jnp.float32, -lim1, lim1)
        w2 = jax.random.uniform(kw2, (c_hid, c_out), jnp.float32, -lim2, lim2)
        b2 = jax.random.uniform(kb2, (c_out,), jnp.float32, -lim2, lim2)
        return w1, b1, w2, b2

    k1, k2, kx1, kx2, kx3 = jax.random.split(key, 5)

    # ---- Case 1: f32 MXU operands, tight check; multi-tile grid with a
    # partial last tile (N=40, TM=16 -> 3 tiles, last one masked).
    N1, CI1, CH1, CO1 = 40, 16, 32, 16
    w1, b1, w2, b2 = init_params(k1, CI1, CH1, CO1)
    x1 = jax.random.normal(kx1, (N1, CI1), dtype=jnp.float32)
    fwd1 = make_mlp_with_context(w1, b1, w2, b2,
                                 compute_dtype=jnp.float32, tile_rows=16)
    out1, nh1 = fwd1(x1)                           # first call: hidden = zeros
    jax.block_until_ready((out1, nh1))
    ro1, rh1 = reference_forward(x1, jnp.zeros_like(x1), w1, b1, w2, b2)
    assert out1.shape == (N1, CO1) and nh1.shape == (N1, CH1)
    assert out1.dtype == x1.dtype and nh1.dtype == x1.dtype
    assert jnp.allclose(out1, ro1, atol=1e-4, rtol=1e-4)
    assert jnp.allclose(nh1, rh1, atol=1e-4, rtol=1e-4)

    # ---- Case 2: C_in == C_hid so the recurrence type-checks; default bf16
    # MXU operands, in-place hidden aliasing, 2-step rollout with the hidden
    # carried straight back (no pad/cast/slice on the carry).
    N2, CI2, CH2, CO2 = 24, 32, 32, 16
    w1b, b1b, w2b, b2b = init_params(k2, CI2, CH2, CO2)
    x2 = jax.random.normal(kx2, (N2, CI2), dtype=jnp.float32)
    fwd2 = make_mlp_with_context(w1b, b1b, w2b, b2b)     # bf16 MXU by default
    out2a, nh2a = fwd2(x2)                               # step 1
    out2b, nh2b = fwd2(x2, nh2a)                         # step 2 (recurrent)
    jax.block_until_ready((out2a, nh2a, out2b, nh2b))
    ro_a, rh_a = reference_forward(x2, jnp.zeros_like(x2), w1b, b1b, w2b, b2b)
    ro_b, rh_b = reference_forward(x2, rh_a, w1b, b1b, w2b, b2b)
    assert nh2a.dtype == x2.dtype                        # f32 carry, no rounding
    assert jnp.allclose(out2a, ro_a, atol=5e-2, rtol=5e-2)
    assert jnp.allclose(nh2a, rh_a, atol=5e-2, rtol=5e-2)
    assert jnp.allclose(out2b, ro_b, atol=1e-1, rtol=1e-1)
    assert jnp.allclose(nh2b, rh_b, atol=1e-1, rtol=1e-1)

    # ---- Case 3: bf16 activations (exercises the 16-row sublane tiling and
    # bf16 output emission), same params as case 2.
    N3 = 32
    x3 = jax.random.normal(kx3, (N3, CI2), dtype=jnp.float32).astype(jnp.bfloat16)
    out3, nh3 = fwd2(x3)
    jax.block_until_ready((out3, nh3))
    assert out3.dtype == jnp.bfloat16 and nh3.dtype == jnp.bfloat16
    ro3, rh3 = reference_forward(x3.astype(jnp.float32),
                                 jnp.zeros((N3, CI2), jnp.float32),
                                 w1b, b1b, w2b, b2b)
    assert jnp.allclose(out3.astype(jnp.float32), ro3, atol=1e-1, rtol=1e-1)
    assert jnp.allclose(nh3.astype(jnp.float32), rh3, atol=1e-1, rtol=1e-1)

    print("KERNEL_OK")
</pallas_src>

<mosaic_0001>
module attributes {stable_mosaic.version = 11 : i64} {
  func.func @_mlp_with_context_kernel(%arg0: i32, %arg1: memref<16x16xf32, #tpu.memory_space<vmem>>, %arg2: memref<16x16xf32, #tpu.memory_space<vmem>>, %arg3: memref<16x32xf32, #tpu.memory_space<vmem>>, %arg4: memref<1x32xf32, #tpu.memory_space<vmem>>, %arg5: memref<32x16xf32, #tpu.memory_space<vmem>>, %arg6: memref<1x16xf32, #tpu.memory_space<vmem>>, %arg7: memref<16x16xf32, #tpu.memory_space<vmem>>, %arg8: memref<16x32xf32, #tpu.memory_space<vmem>>) attributes {dimension_semantics = [#tpu.dimension_semantics<parallel>], iteration_bounds = array<i64: 3>, scalar_prefetch = 0 : i64, scratch_operands = 0 : i64, tpu.core_type = #tpu.core_type<tc>, window_params = [{transform_indices = @transform_0, window_bounds = array<i64: 16, 16>}, {transform_indices = @transform_1, window_bounds = array<i64: 16, 16>}, {pipeline_mode = #tpu.pipeline_mode<synchronous>, transform_indices = @transform_2, window_bounds = array<i64: 16, 32>}, {pipeline_mode = #tpu.pipeline_mode<synchronous>, transform_indices = @transform_3, window_bounds = array<i64: 1, 32>}, {pipeline_mode = #tpu.pipeline_mode<synchronous>, transform_indices = @transform_4, window_bounds = array<i64: 32, 16>}, {pipeline_mode = #tpu.pipeline_mode<synchronous>, transform_indices = @transform_5, window_bounds = array<i64: 1, 16>}, {transform_indices = @transform_6, window_bounds = array<i64: 16, 16>}, {transform_indices = @transform_7, window_bounds = array<i64: 16, 32>}]} {
    %c0 = arith.constant 0 : index
    %c0_0 = arith.constant 0 : index
    %0 = vector.load %arg1[%c0, %c0_0] : memref<16x16xf32, #tpu.memory_space<vmem>>, vector<16x16xf32>
    %c0_1 = arith.constant 0 : index
    %c0_2 = arith.constant 0 : index
    %1 = vector.load %arg2[%c0_1, %c0_2] : memref<16x16xf32, #tpu.memory_space<vmem>>, vector<16x16xf32>
    %2 = arith.addf %0, %1 : vector<16x16xf32>
    %c0_3 = arith.constant 0 : index
    %c0_4 = arith.constant 0 : index
    %3 = vector.load %arg3[%c0_3, %c0_4] : memref<16x32xf32, #tpu.memory_space<vmem>>, vector<16x32xf32>
    %cst = arith.constant dense<0.000000e+00> : vector<16x32xf32>
    %4 = tpu.matmul %2, %3, %cst {dimension_numbers = #tpu.dot_dimension_numbers<[1], [0], [0], [1], [0, 0, 1, 1], [], []>} : vector<16x16xf32>, vector<16x32xf32>, vector<16x32xf32> -> vector<16x32xf32>
    %c0_5 = arith.constant 0 : index
    %c0_6 = arith.constant 0 : index
    %5 = vector.load %arg4[%c0_5, %c0_6] : memref<1x32xf32, #tpu.memory_space<vmem>>, vector<1x32xf32>
    %6 = vector.broadcast %5 : vector<1x32xf32> to vector<16x32xf32>
    %7 = arith.addf %4, %6 : vector<16x32xf32>
    %c0_7 = arith.constant 0 : index
    %c0_8 = arith.constant 0 : index
    %8 = vector.load %arg8[%c0_7, %c0_8] : memref<16x32xf32, #tpu.memory_space<vmem>>, vector<16x32xf32>
    tpu.vector_store %arg8[%c0_7, %c0_8], %7 {strides = array<i32>} : memref<16x32xf32, #tpu.memory_space<vmem>>, vector<16x32xf32>,
    %cst_9 = arith.constant 0.000000e+00 : f32
    %9 = vector.broadcast %cst_9 : f32 to vector<16x32xf32>
    %10 = arith.maximumf %7, %9 : vector<16x32xf32>
    %c0_10 = arith.constant 0 : index
    %c0_11 = arith.constant 0 : index
    %11 = vector.load %arg5[%c0_10, %c0_11] : memref<32x16xf32, #tpu.memory_space<vmem>>, vector<32x16xf32>
    %cst_12 = arith.constant dense<0.000000e+00> : vector<16x16xf32>
    %12 = tpu.matmul %10, %11, %cst_12 {dimension_numbers = #tpu.dot_dimension_numbers<[1], [0], [0], [1], [0, 0, 1, 1], [], []>} : vector<16x32xf32>, vector<32x16xf32>, vector<16x16xf32> -> vector<16x16xf32>
    %c0_13 = arith.constant 0 : index
    %c0_14 = arith.constant 0 : index
    %13 = vector.load %arg6[%c0_13, %c0_14] : memref<1x16xf32, #tpu.memory_space<vmem>>, vector<1x16xf32>
    %14 = vector.broadcast %13 : vector<1x16xf32> to vector<16x16xf32>
    %15 = arith.addf %12, %14 : vector<16x16xf32>
    %c0_15 = arith.constant 0 : index
    %c0_16 = arith.constant 0 : index
    %16 = vector.load %arg7[%c0_15, %c0_16] : memref<16x16xf32, #tpu.memory_space<vmem>>, vector<16x16xf32>
    tpu.vector_store %arg7[%c0_15, %c0_16], %15 {strides = array<i32>} : memref<16x16xf32, #tpu.memory_space<vmem>>, vector<16x16xf32>,
    return
  }
  func.func @transform_0(%arg0: i32) -> (i32, i32) {
    %c0_i32 = arith.constant 0 : i32
    %c0_i32_0 = arith.constant 0 : i32
    return %arg0, %c0_i32 : i32, i32
  }
  func.func @transform_1(%arg0: i32) -> (i32, i32) {
    %c0_i32 = arith.constant 0 : i32
    %c0_i32_0 = arith.constant 0 : i32
    return %arg0, %c0_i32 : i32, i32
  }
  func.func @transform_2(%arg0: i32) -> (i32, i32) {
    %c0_i32 = arith.constant 0 : i32
    %c0_i32_0 = arith.constant 0 : i32
    %c0_i32_1 = arith.constant 0 : i32
    return %c0_i32, %c0_i32_0 : i32, i32
  }
  func.func @transform_3(%arg0: i32) -> (i32, i32) {
    %c0_i32 = arith.constant 0 : i32
    %c0_i32_0 = arith.constant 0 : i32
    %c0_i32_1 = arith.constant 0 : i32
    return %c0_i32, %c0_i32_0 : i32, i32
  }
  func.func @transform_4(%arg0: i32) -> (i32, i32) {
    %c0_i32 = arith.constant 0 : i32
    %c0_i32_0 = arith.constant 0 : i32
    %c0_i32_1 = arith.constant 0 : i32
    return %c0_i32, %c0_i32_0 : i32, i32
  }
  func.func @transform_5(%arg0: i32) -> (i32, i32) {
    %c0_i32 = arith.constant 0 : i32
    %c0_i32_0 = arith.constant 0 : i32
    %c0_i32_1 = arith.constant 0 : i32
    return %c0_i32, %c0_i32_0 : i32, i32
  }
  func.func @transform_6(%arg0: i32) -> (i32, i32) {
    %c0_i32 = arith.constant 0 : i32
    %c0_i32_0 = arith.constant 0 : i32
    return %arg0, %c0_i32 : i32, i32
  }
  func.func @transform_7(%arg0: i32) -> (i32, i32) {
    %c0_i32 = arith.constant 0 : i32
    %c0_i32_0 = arith.constant 0 : i32
    return %arg0, %c0_i32 : i32, i32
  }
}

</mosaic_0001>

<bundles_post_ra>
// kernel: _forward.1
= control target key start
LH: loop header
LB: loop body
LE: loop exit
PB: predicated region body
PF: predicated region fallthrough
CT: control target
= control target key end

     0   :  { %s1415_s24 = smov 0   ;;  %s1417_s25 = smov 0   ;;  %s1564_s0 = inlined_call_operand.vmem [shape: f32[40,16], index: 0, kind: input, shape index: {}]   ;;  %s1565_s1 = inlined_call_operand.vmem [shape: f32[40,16], index: 1, kind: input, shape index: {}]   ;;  %s1566_s2 = inlined_call_operand.vmem [shape: f32[16,32], index: 2, kind: input, shape index: {}]   ;;  %s1567_s3 = inlined_call_operand.vmem [shape: f32[1,32], index: 3, kind: input, shape index: {}]   ;;  %s1568_s4 = inlined_call_operand.vmem [shape: f32[32,16], index: 4, kind: input, shape index: {}]   ;;  %s1569_s5 = inlined_call_operand.vmem [shape: f32[1,16], index: 5, kind: input, shape index: {}]   ;;  %s1570_s6 = inlined_call_operand.vmem [shape: f32[40,16], index: 6, kind: output, shape index: {0}]   ;;  %s1571_s7 = inlined_call_operand.vmem [shape: f32[40,32], index: 7, kind: output, shape index: {1}]  }
   0x1   :  { %s1419_s26 = smov 0  }
   0x2 LB: > { %s1428_s27 = sadd.s32 4294967295, %s1309_s26   ;;  %s1430_s28 = sadd.s32 1, %s1309_s26   ;;  %s1309_s26 = sphi %s1419_s26, %s1575_s26   ;;  %s1305_s25 = sphi %s1417_s25, %s1574_s25   ;;  %s1301_s24 = sphi %s1415_s24, %s1573_s24  }
   0x3   : > { %s158_s29 = ssub.s32 %s1309_s26, %s1430_s28  ;;  %s161_s30 = sadd.s32 1, %s1305_s25 }
   0x4   : > { %p159_p0 = scmp.eq.s32.totalorder %s158_s29, 0  ;;  %p171_p1 = scmp.ne.s32.totalorder %s1305_s25, %s1301_s24 }
   0x5   : > { %p172_p2 = scmp.eq.s32.totalorder %s1428_s27, 2  ;;  %p980_p3 = scmp.ge.s32.totalorder %s1309_s26, 1 }
   0x6   : > { %s1438_s8 = scalar_select %p159_p0, %s1305_s25, %s161_s30  }
   0x7   : > { %p1440_p4 = por %p172_p2, %p171_p1  ;;  %p268_p5 = scmp.lt.s32.totalorder %s1309_s26, 4 }
   0x9   : > { %p269_p6 = pnand %p980_p3, %p268_p5 }
   0xa   : > { %v360_v0 = vld [vmem:[%s1566_s2] sm:$0xff] (!%p269_p6)  ;;  %v361_v1 = vld [vmem:[%s1566_s2 + $0x8] sm:$0xff] (!%p269_p6)  ;;  %s1451_s14 = sshll.u32 (!%p269_p6), %s1428_s27, 1  ;;  %vm369_vm0 = vcmask (!%p269_p6), 130048   ;;  %v458_v12 = vld [vmem:[%s1568_s4 + $0x10] sm:$0xff] (!%p269_p6)  ;;  %s307_s15 = sand.u32 (!%p269_p6), 1, %s1301_s24  }
   0xb   : > { %272 = sbr.rel (%p269_p6) target bundleno = 566 (0x236), region = 44  ;;  %v456_v2 = vld [vmem:[%s1568_s4] sm:$0xff] (!%p269_p6)  ;;  %v1059_v3 = vpack.c.bf16 (!%p269_p6), %v361_v1, %v360_v0  ;;  %p321_p7 = scmp.lt.s32.totalorder (!%p269_p6), %s1451_s14, 4  ;;  %v457_v4 = vld [vmem:[%s1568_s4 + $0x8] sm:$0xff] (!%p269_p6)  ;;  %v459_v13 = vld [vmem:[%s1568_s4 + $0x18] sm:$0xff] (!%p269_p6)  ;;  %vm451_vm1 = vcmask (!%p269_p6), 261120  }
   0xc   : > { %v1063_v5 = vpack.c.bf16 (!%p269_p6), %v457_v4, %v456_v2  ;;  %v1067_v14 = vpack.c.bf16 (!%p269_p6), %v459_v13, %v458_v12  ;;  %s981_s16 = sshll.u32 (!%p269_p6), %s307_s15, 4  ;;  %v987_v15 = vld [vmem:[%s1567_s3] ss:$0 sm:$0xff] (!%p269_p6) }
   0xd   : > { %1060 = vmatprep.subr.bf16.mxu0 (!%p269_p6), %v1059_v3  ;;  %v990_v22 = vld [vmem:[%s1569_s5] ss:$0 sm:$0xff] (!%p269_p6)  ;;  %s1486_s21 = scalar_lea.vmem (!%p269_p6), [#allocation2], %s981_s16  }
   0xe   : > { %1062 = vmatpush3.bf16.msra.mxu0 (!%p269_p6), %v1059_v3  ;;  %1064 = vmatprep.subr.bf16.mxu1 (!%p269_p6), %v1063_v5 }
   0xf   : > { %1066 = vmatpush3.bf16.msra.mxu1 (!%p269_p6), %v1063_v5 }
  0x10   : > { %1068 = vmatprep.subr.bf16.mxu1 (!%p269_p6), %v1067_v14 }
  0x12   : > { %s322_s19 = scalar_select %p321_p7, %s1451_s14, 4 }
  0x13   : > { %1070 = vmatpush3.bf16.msra.mxu1 %v1067_v14  ;;  %s562_s22 = ssub.s32 (%p1440_p4), 5, %s1451_s14 }
  0x14   : > { %s984_s20 = sshll.u32 %s322_s19, 3  ;;  %s1479_s19 = scalar_lea.vmem [#allocation3], %s981_s16  }
  0x15   : > { %s324_s23 = scalar_lea.vmem %s1564_s0, %s984_s20  ;;  %s338_s30 = scalar_lea.vmem %s1565_s1, %s984_s20 }
  0x16   : > { %v354_v6 = vld [vmem:[%s324_s23] sm:$0xff]  ;;  %v355_v7 = vld [vmem:[%s324_s23 + $0x8] sm:$0xff]  ;;  %s1025_s23 = sshll.u32 (%p1440_p4), %s1428_s27, 4  ;;  %p563_p8 = scmp.lt.s32.totalorder (%p1440_p4), %s562_s22, 2 }
  0x17   : > { %v356_v8 = vld [vmem:[%s338_s30] sm:$0xff]  ;;  %v357_v9 = vld [vmem:[%s338_s30 + $0x8] sm:$0xff]  ;;  %s1499_s30 = scalar_lea.vmem (%p1440_p4), %s1570_s6, %s1025_s23  }
  0x18   : > { %v358_v10 = vadd.f32 %v356_v8, %v354_v6  ;;  %v359_v11 = vadd.f32 %v357_v9, %v355_v7 }
  0x1a   : > { %1045 = vmatprep.mubr.msk.f32.mxu0 %vm369_vm0, %v358_v10 }
  0x1b   : > { %1046 = vmatmul.mubr.msk.f32.vlgmr.msra.gmra.mrb[0].mxu0 %vm369_vm0, %v359_v11 }
  0xee   : > { %v1047_v16 = vpop.f32.mrb[0].mxu0 }
  0xef   : > { %v448_v17 = vadd.f32 %v1047_v16, %v987_v15  ;;  %v442_v18 = vpop.f32.mrb[1].mxu0 }
  0xf0   : > { %v443_v19 = vadd.f32 %v987_v15, %v442_v18 }
  0xf1   : > { %453 = vst.msk [vmem:[%s1479_s19 + $0x8] sm:$0xff] %vm451_vm1, %v448_v17  ;;  %v455_v21 = vmax.f32 %v448_v17, 0.0 }
  0xf2   : > { %452 = vst.msk [vmem:[%s1479_s19] sm:$0xff] %vm451_vm1, %v443_v19  ;;  %v454_v20 = vmax.f32 %v443_v19, 0.0 }
  0xf4   : > { %1056 = vmatprep.mubr.msk.f32.mxu1 %vm451_vm1, %v454_v20 }
  0xf5   : > { %1057 = vmatmul.mubr.msk.f32.vlgmr.msra.gmra.mrb[0].mxu1 %vm451_vm1, %v455_v21 }
 0x1c6   : > { %560 = sbr.rel (!%p1440_p4) target bundleno = 510 (0x1fe), region = 48 }
 0x1c8   : > { %v1058_v23 = vpop.f32.mrb[0].mxu1 }
 0x1c9   : > { %v545_v24 = vadd.f32 %v1058_v23, %v990_v22  ;;  %v539_v25 = vpop.f32.mrb[1].mxu1 }
 0x1ca   : > { %v540_v26 = vadd.f32 %v990_v22, %v539_v25 }
 0x1cb   : > { %549 = vst.msk [vmem:[%s1486_s21 + $0x8] sm:$0xff] %vm369_vm0, %v545_v24 }
 0x1cc   : > { %548 = vst.msk [vmem:[%s1486_s21] sm:$0xff] %vm369_vm0, %v540_v26 }
 0x1cd   : > { %s1577_s22 = smov (!%p563_p8, %s562_s22), 2 }
 0x1ce   : > { %s996_s10 = sshll.u32 %s1577_s22, 7 }
 0x1cf   : > { %p999_p9 = scmp.eq.s32.totalorder %s996_s10, 0 }
 0x1d0   : > { %s1505_s11 = sshrl.u32 (!%p999_p9), %s1577_s22, 1 }
 0x1d1   : > { %571 = sbr.rel (%p999_p9) target bundleno = 510 (0x1fe), region = 52  ;;  %p1000_p10 = scmp.le.s32.totalorder (!%p999_p9), %s1505_s11, 0 }
 0x1d8   : > { %890 = sbr.rel (%p1000_p10) target bundleno = 489 (0x1e9), region = 203  ;;  %s1311_s12 = smov (!%p1000_p10), %s1499_s30  }
 0x1d9   : > { %s1315_s13 = smov (!%p1000_p10), %s1486_s21   ;;  %s1319_s15 = smov (!%p1000_p10), 0  }
 0x1da   : > { %s1323_s16 = smov (!%p1000_p10), 0  }
 0x1df LB: >> { %v635_v27 = vld [vmem:[%s1317_s13] sm:$0xff]  ;;  %v637_v28 = vld [vmem:[%s1317_s13 + $0x8] sm:$0xff]  ;;  %s639_s17 = sadd.s32 1, %s1321_s15  ;;  %s629_s16 = sadd.s32 1, %s1325_s16   ;;  %s1325_s16 = sphi %s1323_s16, %s629_s16   ;;  %s1321_s15 = sphi %s1319_s15, %s1320_s15   ;;  %s1317_s13 = sphi %s1315_s13, %s644_s13   ;;  %s1313_s12 = sphi %s1311_s12, %s645_s12  }
 0x1e0   : >> { %636 = vst [vmem:[%s1313_s12] sm:$0xff] %v635_v27  ;;  %638 = vst [vmem:[%s1313_s12 + $0x8] sm:$0xff] %v637_v28  ;;  %p640_p11 = scmp.ge.s32.totalorder %s639_s17, %s1505_s11  ;;  %p628_p12 = scmp.ge.s32.totalorder %s629_s16, %s1505_s11 }
 0x1e2   : >> { %s1579_s17 = smov (%p640_p11, %s639_s17), 0  ;;  %631 = sbr.rel (!%p628_p12) target bundleno = 479 (0x1df), region = 209 }
 0x1e3   : >> { %s1001_s18 = sshll.u32 %s1579_s17, 4  ;;  %s1320_s15 = smov %s1579_s17  }
 0x1e4   : >> { %s644_s13 = scalar_lea.vmem %s1486_s21, %s1001_s18 [#allocation2]   ;;  %s645_s12 = scalar_lea.vmem %s1499_s30, %s1001_s18  }
 0x1e9 PF: > { %s1515_s24 = sand.u32 1, %s1577_s22   ;;  %s1026_s20 = sshll.u32 %s1505_s11, 4 }
 0x1ea   : > { %s650_s23 = scalar_lea.vmem %s1486_s21, %s1026_s20 [#allocation2]   ;;  %s652_s26 = scalar_lea.vmem %s1499_s30, %s1026_s20  }
 0x1eb   : > { %p1006_p13 = scmp.le.s32.totalorder %s1515_s24, 0 }
 0x1ec   : > { %s1327_s29 = smov (!%p1006_p13), %s652_s26   ;;  %s1331_s10 = smov (!%p1006_p13), %s650_s23  }
 0x1ed   : > { %904 = sbr.rel (%p1006_p13) target bundleno = 510 (0x1fe), region = 214  ;;  %s1335_s12 = smov (!%p1006_p13), 0  }
 0x1ee   : > { %s1339_s13 = smov (!%p1006_p13), 0  }
 0x1f4 LB: >> { %v662_v29 = vld [vmem:[%s1333_s10] sm:$0xff]  ;;  %s664_s22 = sadd.s32 1, %s1337_s12  ;;  %s656_s13 = sadd.s32 1, %s1341_s13   ;;  %s1341_s13 = sphi %s1339_s13, %s656_s13   ;;  %s1337_s12 = sphi %s1335_s12, %s1336_s12   ;;  %s1333_s10 = sphi %s1331_s10, %s669_s10   ;;  %s1329_s29 = sphi %s1327_s29, %s670_s29  }
 0x1f5   : >> { %663 = vst [vmem:[%s1329_s29] sm:$0xff] %v662_v29  ;;  %p665_p0 = scmp.ge.s32.totalorder %s664_s22, %s1515_s24  ;;  %p655_p1 = scmp.ge.s32.totalorder %s656_s13, %s1515_s24 }
 0x1f7   : >> { %s1581_s22 = smov (%p665_p0, %s664_s22), 0  ;;  %658 = sbr.rel (!%p655_p1) target bundleno = 500 (0x1f4), region = 220 }
 0x1f8   : >> { %s1007_s21 = sshll.u32 %s1581_s22, 3  ;;  %s1336_s12 = smov %s1581_s22  }
 0x1f9   : >> { %s669_s10 = scalar_lea.vmem %s650_s23, %s1007_s21 [#allocation2]   ;;  %s670_s29 = scalar_lea.vmem %s652_s26, %s1007_s21  }
 0x1fe PF: > { %676 = sbr.rel (!%p1440_p4) target bundleno = 566 (0x236), region = 100  ;;  %s678_s30 = ssub.s32 (%p1440_p4), 5, %s1451_s14 }
 0x1ff   : > { %s1028_s11 = sshll.u32 (%p1440_p4), %s1428_s27, 4  ;;  %p679_p2 = scmp.lt.s32.totalorder (%p1440_p4), %s678_s30, 2 }
 0x200   : > { %s1530_s17 = scalar_lea.vmem (%p1440_p4), %s1571_s7, %s1028_s11  }
 0x205   : > { %s1583_s30 = smov (!%p679_p2, %s678_s30), 2 }
 0x206   : > { %s1010_s18 = sshll.u32 %s1583_s30, 7 }
 0x207   : > { %p1013_p3 = scmp.eq.s32.totalorder %s1010_s18, 0 }
 0x208   : > { %s1536_s24 = sshrl.u32 (!%p1013_p3), %s1583_s30, 1 }
 0x209   : > { %687 = sbr.rel (%p1013_p3) target bundleno = 566 (0x236), region = 104  ;;  %p1014_p4 = scmp.le.s32.totalorder (!%p1013_p3), %s1536_s24, 0 }
 0x210   : > { %918 = sbr.rel (%p1014_p4) target bundleno = 545 (0x221), region = 225  ;;  %s1343_s27 = smov (!%p1014_p4), %s1530_s17  }
 0x211   : > { %s1347_s9 = smov (!%p1014_p4), %s1479_s19   ;;  %s1351_s14 = smov (!%p1014_p4), 0  }
 0x212   : > { %s1355_s20 = smov (!%p1014_p4), 0  }
 0x217 LB: >> { %v751_v30 = vld [vmem:[%s1349_s9] sm:$0xff]  ;;  %v753_v31 = vld [vmem:[%s1349_s9 + $0x8] sm:$0xff]  ;;  %s755_s23 = sadd.s32 1, %s1353_s14  ;;  %s745_s20 = sadd.s32 1, %s1357_s20   ;;  %s1357_s20 = sphi %s1355_s20, %s745_s20   ;;  %s1353_s14 = sphi %s1351_s14, %s1352_s14   ;;  %s1349_s9 = sphi %s1347_s9, %s760_s9   ;;  %s1345_s27 = sphi %s1343_s27, %s761_s27  }
 0x218   : >> { %752 = vst [vmem:[%s1345_s27] sm:$0xff] %v751_v30  ;;  %754 = vst [vmem:[%s1345_s27 + $0x8] sm:$0xff] %v753_v31  ;;  %p756_p5 = scmp.ge.s32.totalorder %s755_s23, %s1536_s24  ;;  %p744_p6 = scmp.ge.s32.totalorder %s745_s20, %s1536_s24 }
 0x21a   : >> { %s1585_s23 = smov (%p756_p5, %s755_s23), 0  ;;  %747 = sbr.rel (!%p744_p6) target bundleno = 535 (0x217), region = 231 }
 0x21b   : >> { %s1015_s26 = sshll.u32 %s1585_s23, 4  ;;  %s1352_s14 = smov %s1585_s23  }
 0x21c   : >> { %s760_s9 = scalar_lea.vmem %s1479_s19, %s1015_s26 [#allocation3]   ;;  %s761_s27 = scalar_lea.vmem %s1530_s17, %s1015_s26  }
 0x221 PF: > { %s1546_s29 = sand.u32 1, %s1583_s30   ;;  %s1029_s10 = sshll.u32 %s1536_s24, 4 }
 0x222   : > { %s766_s12 = scalar_lea.vmem %s1479_s19, %s1029_s10 [#allocation3]   ;;  %s768_s13 = scalar_lea.vmem %s1530_s17, %s1029_s10  }
 0x223   : > { %p1020_p7 = scmp.le.s32.totalorder %s1546_s29, 0 }
 0x224   : > { %s1359_s22 = smov (!%p1020_p7), %s768_s13   ;;  %s1363_s21 = smov (!%p1020_p7), %s766_s12  }
 0x225   : > { %932 = sbr.rel (%p1020_p7) target bundleno = 566 (0x236), region = 236  ;;  %s1367_s11 = smov (!%p1020_p7), 0  }
 0x226   : > { %s1371_s15 = smov (!%p1020_p7), 0  }
 0x22c LB: >> { %v778_v32 = vld [vmem:[%s1365_s21] sm:$0xff]  ;;  %s780_s30 = sadd.s32 1, %s1369_s11  ;;  %s772_s15 = sadd.s32 1, %s1373_s15   ;;  %s1373_s15 = sphi %s1371_s15, %s772_s15   ;;  %s1369_s11 = sphi %s1367_s11, %s1368_s11   ;;  %s1365_s21 = sphi %s1363_s21, %s785_s21   ;;  %s1361_s22 = sphi %s1359_s22, %s786_s22  }
 0x22d   : >> { %779 = vst [vmem:[%s1361_s22] sm:$0xff] %v778_v32  ;;  %p781_p8 = scmp.ge.s32.totalorder %s780_s30, %s1546_s29  ;;  %p771_p9 = scmp.ge.s32.totalorder %s772_s15, %s1546_s29 }
 0x22f   : >> { %s1587_s30 = smov (%p781_p8, %s780_s30), 0  ;;  %774 = sbr.rel (!%p771_p9) target bundleno = 556 (0x22c), region = 242 }
 0x230   : >> { %s1021_s19 = sshll.u32 %s1587_s30, 3  ;;  %s1368_s11 = smov %s1587_s30  }
 0x231   : >> { %s785_s21 = scalar_lea.vmem %s766_s12, %s1021_s19 [#allocation3]   ;;  %s786_s22 = scalar_lea.vmem %s768_s13, %s1021_s19  }
 0x236 PF: > { %p15_p10 = scmp.ge.s32.totalorder %s1430_s28, 5   ;;  %s1573_s24 = smov %s1305_s25 }
 0x237   : > { %s1574_s25 = smov %s1438_s8  ;;  %s1575_s26 = smov %s1430_s28 }
 0x238   :  { %17 = sbr.rel (!%p15_p10) target bundleno = 2 (0x2), region = 253 }

</bundles_post_ra>
